<compile_context>
chip_gen: v7x
topology: tpu7x:2x2x1
jax: 0.10.0
libtpu: 0.0.40
codegen_flags: <defaults>
</compile_context>

<pallas_src>
import numpy as np
import jax
import jax.numpy as jnp
from jax import lax
from jax.experimental import pallas as pl
from jax.experimental.pallas import tpu as pltpu

DILATIONS = (1, 2, 4, 8, 16)


def _make_kernel(H, WC):
    def kernel(x_ref, w_ref, b_ref, o_ref):
        # x_ref: (1, H, WC) f32   w_ref: (5, 3*WC, WC)   b_ref: (5, WC)   o_ref: (1, H, WC)
        x = x_ref[0]                      # (H, WC), lane-dense
        acc = x
        cur = x

        for i, d in enumerate(DILATIONS):
            if d < H:
                zrows = jnp.zeros((d, WC), jnp.float32)
                # ky=0 tap reads row h-d (zero for h<d); ky=2 tap reads row h+d (zero for h>=H-d).
                top = jnp.concatenate([zrows, cur[:H - d, :]], axis=0)
                bot = jnp.concatenate([cur[d:, :], zrows], axis=0)
                tile = jnp.concatenate([top, cur, bot], axis=-1)      # (H, 3*WC)
                w = w_ref[i]                                          # (3*WC, WC)
            else:
                # Dilation >= H: the +/-d row taps fall entirely inside the zero padding,
                # so only the centre (ky=1) weight block contributes.
                tile = cur
                w = w_ref[i, WC:2 * WC, :]                            # (WC, WC)

            conv = jnp.dot(tile, w, preferred_element_type=jnp.float32)
            conv = conv + b_ref[i:i + 1, :]                           # bias (broadcast over rows)
            cur = jnp.maximum(conv, 0.0)                              # ReLU
            acc = acc + cur

        o_ref[0] = acc.astype(o_ref.dtype)

    return kernel


def _build_banded_weights(weights_hwio, W):
    """(5, 3, 3, Cin, Cout) HWIO weights -> (5, 3*W*C, W*C) block-banded matmul weights.

    big[i, ky*W*C + ws*C + cin, wd*C + cout] = weights[i, ky, kx, cin, cout]
    whenever ws == wd + (kx-1)*d_i and 0 <= ws < W (zero otherwise): this encodes both the
    kx tap offsets and the zero padding along the x axis, so each dilation is one matmul.
    """
    n, KY, KX, C, _ = weights_hwio.shape
    shifts = np.zeros((n, KX, W, W), np.float32)
    for i, d in enumerate(DILATIONS):
        for kx in range(KX):
            shifts[i, kx] = np.eye(W, W, k=-(kx - 1) * d, dtype=np.float32)
    big = jnp.einsum('nxsd,nyxio->nysido',
                     jnp.asarray(shifts), weights_hwio.astype(jnp.float32))
    return big.reshape(n, KY * W * C, W * C)


def dblock_more_dilate(x_nhwc, weights_hwio, biases):
    """x_nhwc: (B, H, W, C) f32. weights_hwio: (5, 3, 3, C, C). biases: (5, C)."""
    B, H, W, C = x_nhwc.shape
    WC = W * C

    x2 = x_nhwc.reshape(B, H, WC)                          # lane-dense activation slab
    w_big = _build_banded_weights(weights_hwio, W)         # (5, 3*WC, WC)
    b_big = jnp.tile(biases.astype(jnp.float32), (1, W))   # (5, WC), [i, w*C+c] = biases[i, c]

    kernel = _make_kernel(H, WC)

    out2 = pl.pallas_call(
        kernel,
        out_shape=jax.ShapeDtypeStruct((B, H, WC), jnp.float32),
        grid_spec=pltpu.PrefetchScalarGridSpec(
            num_scalar_prefetch=0,
            grid=(B,),
            in_specs=[
                pl.BlockSpec((1, H, WC), lambda b: (b, 0, 0)),
                pl.BlockSpec((5, 3 * WC, WC), lambda b: (0, 0, 0)),  # weights stay resident
                pl.BlockSpec((5, WC), lambda b: (0, 0)),
            ],
            out_specs=pl.BlockSpec((1, H, WC), lambda b: (b, 0, 0)),
        ),
        compiler_params=pltpu.CompilerParams(
            dimension_semantics=("parallel",)),
    )(x2, w_big, b_big)

    return out2.reshape(B, H, W, C)


def dblock_reference(x, weights_hwio, biases):
    """Pure-JAX reference mirroring the PyTorch forward (for verification)."""
    cur = x
    acc = x
    for i, d in enumerate(DILATIONS):
        y = lax.conv_general_dilated(
            cur, weights_hwio[i],
            window_strides=(1, 1),
            padding=((d, d), (d, d)),
            rhs_dilation=(d, d),
            dimension_numbers=("NHWC", "HWIO", "NHWC"))
        y = jnp.maximum(y + biases[i][None, None, None, :], 0.0)
        acc = acc + y
        cur = y
    return acc


if __name__ == "__main__":
    B, C, H, W = 2, 8, 16, 16   # PyTorch input would be NCHW (2, 8, 16, 16); W*C = 128 lanes.

    key = jax.random.PRNGKey(0)
    k_x, k_w = jax.random.split(key)

    # Conv2d weights stored directly as HWIO (3, 3, Cin, Cout) per dilation layer.
    weights = jax.random.normal(k_w, (5, 3, 3, C, C), dtype=jnp.float32) * 0.1
    # The module zeroes conv biases in __init__.
    biases = jnp.zeros((5, C), dtype=jnp.float32)

    x_nchw = jax.random.normal(k_x, (B, C, H, W), dtype=jnp.float32)
    x_nhwc = jnp.transpose(x_nchw, (0, 2, 3, 1))  # layout: NHWC for the kernel

    out = dblock_more_dilate(x_nhwc, weights, biases)
    out = jax.block_until_ready(out)

    ref = dblock_reference(x_nhwc, weights, biases)
    assert out.shape == (B, H, W, C)
    max_err = float(jnp.max(jnp.abs(out - ref)))
    assert jnp.allclose(out, ref, rtol=1e-4, atol=1e-4), max_err

    print("KERNEL_OK")
</pallas_src>

<mosaic_0001>
module attributes {stable_mosaic.version = 11 : i64} {
  func.func @kernel(%arg0: i32, %arg1: memref<1x16x128xf32, #tpu.memory_space<vmem>>, %arg2: memref<5x384x128xf32, #tpu.memory_space<vmem>>, %arg3: memref<5x128xf32, #tpu.memory_space<vmem>>, %arg4: memref<1x16x128xf32, #tpu.memory_space<vmem>>) attributes {dimension_semantics = [#tpu.dimension_semantics<parallel>], iteration_bounds = array<i64: 2>, scalar_prefetch = 0 : i64, scratch_operands = 0 : i64, tpu.core_type = #tpu.core_type<tc>, window_params = [{transform_indices = @transform_0, window_bounds = array<i64: 1, 16, 128>}, {pipeline_mode = #tpu.pipeline_mode<synchronous>, transform_indices = @transform_1, window_bounds = array<i64: 5, 384, 128>}, {pipeline_mode = #tpu.pipeline_mode<synchronous>, transform_indices = @transform_2, window_bounds = array<i64: 5, 128>}, {transform_indices = @transform_3, window_bounds = array<i64: 1, 16, 128>}]} {
    %c0 = arith.constant 0 : index
    %c0_0 = arith.constant 0 : index
    %c0_1 = arith.constant 0 : index
    %0 = vector.load %arg1[%c0, %c0_0, %c0_1] : memref<1x16x128xf32, #tpu.memory_space<vmem>>, vector<1x16x128xf32>
    %1 = vector.shape_cast %0 : vector<1x16x128xf32> to vector<16x128xf32>
    %cst = arith.constant 0.000000e+00 : f32
    %2 = vector.broadcast %cst : f32 to vector<1x128xf32>
    %3 = vector.extract_strided_slice %1 {offsets = [0, 0], sizes = [15, 128], strides = [1, 1]} : vector<16x128xf32> to vector<15x128xf32>
    %4 = tpu.concatenate %2, %3 in 0 : vector<1x128xf32>, vector<15x128xf32> -> vector<16x128xf32>
    %5 = vector.extract_strided_slice %1 {offsets = [1, 0], sizes = [15, 128], strides = [1, 1]} : vector<16x128xf32> to vector<15x128xf32>
    %6 = tpu.concatenate %5, %2 in 0 : vector<15x128xf32>, vector<1x128xf32> -> vector<16x128xf32>
    %7 = tpu.concatenate %4, %1, %6 in 1 : vector<16x128xf32>, vector<16x128xf32>, vector<16x128xf32> -> vector<16x384xf32>
    %c0_2 = arith.constant 0 : index
    %c0_3 = arith.constant 0 : index
    %c0_4 = arith.constant 0 : index
    %8 = vector.load %arg2[%c0_2, %c0_3, %c0_4] : memref<5x384x128xf32, #tpu.memory_space<vmem>>, vector<1x384x128xf32>
    %9 = vector.shape_cast %8 : vector<1x384x128xf32> to vector<384x128xf32>
    %cst_5 = arith.constant dense<0.000000e+00> : vector<16x128xf32>
    %10 = tpu.matmul %7, %9, %cst_5 {dimension_numbers = #tpu.dot_dimension_numbers<[1], [0], [0], [1], [0, 0, 1, 1], [], []>} : vector<16x384xf32>, vector<384x128xf32>, vector<16x128xf32> -> vector<16x128xf32>
    %c0_6 = arith.constant 0 : index
    %c0_7 = arith.constant 0 : index
    %11 = vector.load %arg3[%c0_6, %c0_7] : memref<5x128xf32, #tpu.memory_space<vmem>>, vector<1x128xf32>
    %12 = vector.broadcast %11 : vector<1x128xf32> to vector<16x128xf32>
    %13 = arith.addf %10, %12 : vector<16x128xf32>
    %cst_8 = arith.constant 0.000000e+00 : f32
    %14 = vector.broadcast %cst_8 : f32 to vector<16x128xf32>
    %15 = arith.maximumf %13, %14 : vector<16x128xf32>
    %16 = arith.addf %1, %15 : vector<16x128xf32>
    %cst_9 = arith.constant 0.000000e+00 : f32
    %17 = vector.broadcast %cst_9 : f32 to vector<2x128xf32>
    %18 = vector.extract_strided_slice %15 {offsets = [0, 0], sizes = [14, 128], strides = [1, 1]} : vector<16x128xf32> to vector<14x128xf32>
    %19 = tpu.concatenate %17, %18 in 0 : vector<2x128xf32>, vector<14x128xf32> -> vector<16x128xf32>
    %20 = vector.extract_strided_slice %15 {offsets = [2, 0], sizes = [14, 128], strides = [1, 1]} : vector<16x128xf32> to vector<14x128xf32>
    %21 = tpu.concatenate %20, %17 in 0 : vector<14x128xf32>, vector<2x128xf32> -> vector<16x128xf32>
    %22 = tpu.concatenate %19, %15, %21 in 1 : vector<16x128xf32>, vector<16x128xf32>, vector<16x128xf32> -> vector<16x384xf32>
    %c1 = arith.constant 1 : index
    %c0_10 = arith.constant 0 : index
    %c0_11 = arith.constant 0 : index
    %23 = vector.load %arg2[%c1, %c0_10, %c0_11] : memref<5x384x128xf32, #tpu.memory_space<vmem>>, vector<1x384x128xf32>
    %24 = vector.shape_cast %23 : vector<1x384x128xf32> to vector<384x128xf32>
    %cst_12 = arith.constant dense<0.000000e+00> : vector<16x128xf32>
    %25 = tpu.matmul %22, %24, %cst_12 {dimension_numbers = #tpu.dot_dimension_numbers<[1], [0], [0], [1], [0, 0, 1, 1], [], []>} : vector<16x384xf32>, vector<384x128xf32>, vector<16x128xf32> -> vector<16x128xf32>
    %c1_13 = arith.constant 1 : index
    %c0_14 = arith.constant 0 : index
    %26 = vector.load %arg3[%c1_13, %c0_14] : memref<5x128xf32, #tpu.memory_space<vmem>>, vector<1x128xf32>
    %27 = vector.broadcast %26 : vector<1x128xf32> to vector<16x128xf32>
    %28 = arith.addf %25, %27 : vector<16x128xf32>
    %cst_15 = arith.constant 0.000000e+00 : f32
    %29 = vector.broadcast %cst_15 : f32 to vector<16x128xf32>
    %30 = arith.maximumf %28, %29 : vector<16x128xf32>
    %31 = arith.addf %16, %30 : vector<16x128xf32>
    %cst_16 = arith.constant 0.000000e+00 : f32
    %32 = vector.broadcast %cst_16 : f32 to vector<4x128xf32>
    %33 = vector.extract_strided_slice %30 {offsets = [0, 0], sizes = [12, 128], strides = [1, 1]} : vector<16x128xf32> to vector<12x128xf32>
    %34 = tpu.concatenate %32, %33 in 0 : vector<4x128xf32>, vector<12x128xf32> -> vector<16x128xf32>
    %35 = vector.extract_strided_slice %30 {offsets = [4, 0], sizes = [12, 128], strides = [1, 1]} : vector<16x128xf32> to vector<12x128xf32>
    %36 = tpu.concatenate %35, %32 in 0 : vector<12x128xf32>, vector<4x128xf32> -> vector<16x128xf32>
    %37 = tpu.concatenate %34, %30, %36 in 1 : vector<16x128xf32>, vector<16x128xf32>, vector<16x128xf32> -> vector<16x384xf32>
    %c2 = arith.constant 2 : index
    %c0_17 = arith.constant 0 : index
    %c0_18 = arith.constant 0 : index
    %38 = vector.load %arg2[%c2, %c0_17, %c0_18] : memref<5x384x128xf32, #tpu.memory_space<vmem>>, vector<1x384x128xf32>
    %39 = vector.shape_cast %38 : vector<1x384x128xf32> to vector<384x128xf32>
    %cst_19 = arith.constant dense<0.000000e+00> : vector<16x128xf32>
    %40 = tpu.matmul %37, %39, %cst_19 {dimension_numbers = #tpu.dot_dimension_numbers<[1], [0], [0], [1], [0, 0, 1, 1], [], []>} : vector<16x384xf32>, vector<384x128xf32>, vector<16x128xf32> -> vector<16x128xf32>
    %c2_20 = arith.constant 2 : index
    %c0_21 = arith.constant 0 : index
    %41 = vector.load %arg3[%c2_20, %c0_21] : memref<5x128xf32, #tpu.memory_space<vmem>>, vector<1x128xf32>
    %42 = vector.broadcast %41 : vector<1x128xf32> to vector<16x128xf32>
    %43 = arith.addf %40, %42 : vector<16x128xf32>
    %cst_22 = arith.constant 0.000000e+00 : f32
    %44 = vector.broadcast %cst_22 : f32 to vector<16x128xf32>
    %45 = arith.maximumf %43, %44 : vector<16x128xf32>
    %46 = arith.addf %31, %45 : vector<16x128xf32>
    %cst_23 = arith.constant 0.000000e+00 : f32
    %47 = vector.broadcast %cst_23 : f32 to vector<8x128xf32>
    %48 = vector.extract_strided_slice %45 {offsets = [0, 0], sizes = [8, 128], strides = [1, 1]} : vector<16x128xf32> to vector<8x128xf32>
    %49 = tpu.concatenate %47, %48 in 0 : vector<8x128xf32>, vector<8x128xf32> -> vector<16x128xf32>
    %50 = vector.extract_strided_slice %45 {offsets = [8, 0], sizes = [8, 128], strides = [1, 1]} : vector<16x128xf32> to vector<8x128xf32>
    %51 = tpu.concatenate %50, %47 in 0 : vector<8x128xf32>, vector<8x128xf32> -> vector<16x128xf32>
    %52 = tpu.concatenate %49, %45, %51 in 1 : vector<16x128xf32>, vector<16x128xf32>, vector<16x128xf32> -> vector<16x384xf32>
    %c3 = arith.constant 3 : index
    %c0_24 = arith.constant 0 : index
    %c0_25 = arith.constant 0 : index
    %53 = vector.load %arg2[%c3, %c0_24, %c0_25] : memref<5x384x128xf32, #tpu.memory_space<vmem>>, vector<1x384x128xf32>
    %54 = vector.shape_cast %53 : vector<1x384x128xf32> to vector<384x128xf32>
    %cst_26 = arith.constant dense<0.000000e+00> : vector<16x128xf32>
    %55 = tpu.matmul %52, %54, %cst_26 {dimension_numbers = #tpu.dot_dimension_numbers<[1], [0], [0], [1], [0, 0, 1, 1], [], []>} : vector<16x384xf32>, vector<384x128xf32>, vector<16x128xf32> -> vector<16x128xf32>
    %c3_27 = arith.constant 3 : index
    %c0_28 = arith.constant 0 : index
    %56 = vector.load %arg3[%c3_27, %c0_28] : memref<5x128xf32, #tpu.memory_space<vmem>>, vector<1x128xf32>
    %57 = vector.broadcast %56 : vector<1x128xf32> to vector<16x128xf32>
    %58 = arith.addf %55, %57 : vector<16x128xf32>
    %cst_29 = arith.constant 0.000000e+00 : f32
    %59 = vector.broadcast %cst_29 : f32 to vector<16x128xf32>
    %60 = arith.maximumf %58, %59 : vector<16x128xf32>
    %61 = arith.addf %46, %60 : vector<16x128xf32>
    %c4 = arith.constant 4 : index
    %c128 = arith.constant 128 : index
    %c0_30 = arith.constant 0 : index
    %62 = vector.load %arg2[%c4, %c128, %c0_30] : memref<5x384x128xf32, #tpu.memory_space<vmem>>, vector<1x128x128xf32>
    %63 = vector.shape_cast %62 : vector<1x128x128xf32> to vector<128x128xf32>
    %cst_31 = arith.constant dense<0.000000e+00> : vector<16x128xf32>
    %64 = tpu.matmul %60, %63, %cst_31 {dimension_numbers = #tpu.dot_dimension_numbers<[1], [0], [0], [1], [0, 0, 1, 1], [], []>} : vector<16x128xf32>, vector<128x128xf32>, vector<16x128xf32> -> vector<16x128xf32>
    %c4_32 = arith.constant 4 : index
    %c0_33 = arith.constant 0 : index
    %65 = vector.load %arg3[%c4_32, %c0_33] : memref<5x128xf32, #tpu.memory_space<vmem>>, vector<1x128xf32>
    %66 = vector.broadcast %65 : vector<1x128xf32> to vector<16x128xf32>
    %67 = arith.addf %64, %66 : vector<16x128xf32>
    %cst_34 = arith.constant 0.000000e+00 : f32
    %68 = vector.broadcast %cst_34 : f32 to vector<16x128xf32>
    %69 = arith.maximumf %67, %68 : vector<16x128xf32>
    %70 = arith.addf %61, %69 : vector<16x128xf32>
    %c0_35 = arith.constant 0 : index
    %c0_36 = arith.constant 0 : index
    %c0_37 = arith.constant 0 : index
    %71 = vector.load %arg4[%c0_35, %c0_36, %c0_37] : memref<1x16x128xf32, #tpu.memory_space<vmem>>, vector<1x16x128xf32>
    %72 = vector.shape_cast %71 : vector<1x16x128xf32> to vector<16x128xf32>
    %73 = vector.shape_cast %70 : vector<16x128xf32> to vector<1x16x128xf32>
    tpu.vector_store %arg4[%c0_35, %c0_36, %c0_37], %73 {strides = array<i32>} : memref<1x16x128xf32, #tpu.memory_space<vmem>>, vector<1x16x128xf32>,
    return
  }
  func.func @transform_0(%arg0: i32) -> (i32, i32, i32) {
    %c0_i32 = arith.constant 0 : i32
    %c0_i32_0 = arith.constant 0 : i32
    %c0_i32_1 = arith.constant 0 : i32
    return %arg0, %c0_i32, %c0_i32_0 : i32, i32, i32
  }
  func.func @transform_1(%arg0: i32) -> (i32, i32, i32) {
    %c0_i32 = arith.constant 0 : i32
    %c0_i32_0 = arith.constant 0 : i32
    %c0_i32_1 = arith.constant 0 : i32
    %c0_i32_2 = arith.constant 0 : i32
    return %c0_i32, %c0_i32_0, %c0_i32_1 : i32, i32, i32
  }
  func.func @transform_2(%arg0: i32) -> (i32, i32) {
    %c0_i32 = arith.constant 0 : i32
    %c0_i32_0 = arith.constant 0 : i32
    %c0_i32_1 = arith.constant 0 : i32
    return %c0_i32, %c0_i32_0 : i32, i32
  }
  func.func @transform_3(%arg0: i32) -> (i32, i32, i32) {
    %c0_i32 = arith.constant 0 : i32
    %c0_i32_0 = arith.constant 0 : i32
    %c0_i32_1 = arith.constant 0 : i32
    return %arg0, %c0_i32, %c0_i32_0 : i32, i32, i32
  }
}

</mosaic_0001>

<bundles_post_ra>
// kernel: tpu_custom_call.1
= control target key start
LH: loop header
LB: loop body
LE: loop exit
PB: predicated region body
PF: predicated region fallthrough
CT: control target
= control target key end

     0   :  { %8 = vsyncpa [#allocation3], 0  ;;  %s2592_s0 = inlined_call_operand.hbm [shape: f32[2,16,128], index: 0, kind: input, shape index: {}]   ;;  %s2593_s1 = inlined_call_operand.hbm [shape: f32[5,384,128], index: 1, kind: input, shape index: {}]   ;;  %s2594_s2 = inlined_call_operand.hbm [shape: f32[5,128], index: 2, kind: input, shape index: {}]   ;;  %s2595_s3 = inlined_call_operand.hbm [shape: f32[2,16,128], index: 3, kind: output, shape index: {}]  }
   0x1   :  { %10 = vsyncpa [#allocation3 + $0x1], 0 }
   0x2   :  { %11 = vsyncpa [#allocation6], 0 }
   0x3   :  { %12 = vsyncpa [#allocation4], 0 }
   0x4   :  { %14 = vsyncpa [#allocation4 + $0x1], 0  ;;  %s2299_s12 = smov 0   ;;  %s2301_s13 = smov 0  }
   0x5   :  { %s2303_s14 = smov 0   ;;  %s2305_s15 = smov 0  }
   0x6 LB: > { %s2320_s16 = sadd.s32 4294967295, %s2268_s15   ;;  %s1301_s17 = sadd.s32 4294967294, %s2268_s15   ;;  %s2268_s15 = sphi %s2305_s15, %s2615_s15   ;;  %s2264_s14 = sphi %s2303_s14, %s2614_s14   ;;  %s2260_s13 = sphi %s2301_s13, %s2613_s13   ;;  %s2256_s12 = sphi %s2299_s12, %s2612_s12  }
   0x7   : > { %p40_p0 = scmp.ne.s32.totalorder %s2260_s13, %s2256_s12  ;;  %p2596_p1 = scmp.eq.s32.totalorder %s2320_s16, 0 }
   0x8   : > { %p112_p3 = scmp.eq.s32.totalorder %s1301_s17, 1  ;;  %p1302_p5 = scmp.ge.s32.totalorder %s2268_s15, 1 }
   0x9   : > { %p2329_p4 = por %p2596_p1, %p40_p0  ;;  %p119_p7 = scmp.lt.s32.totalorder %s2268_s15, 3 }
   0xa   : > { %p2334_p6 = por %p112_p3, %p40_p0  ;;  %s2270_s21 = smov [#allocation5]  }
   0xb   : > { %s2599_s18 = scalar_select %p2329_p4, 1, 0 }
   0xc   : > { %s2600_s19 = scalar_select %p2334_p6, 1, 0 }
   0xd   : > { %p2339_p8 = pnand %p1302_p5, %p119_p7  ;;  %s131_s22 = sshll.u32 %s2270_s21, 4  ;;  %s2343_s22 = int_to_ptr.vmem [resolvable:$true] %s131_s22 }
   0xe   : > { %s2271_s24 = smov [#allocation7]   ;;  %s2112_s28 = scalar_lea.hbm %s2593_s1, 30720 }
   0xf   : > { %p2052_p9 = pneg %p2339_p8  ;;  %s145_s25 = sshll.u32 %s2271_s24, 4  ;;  %s2354_s25 = int_to_ptr.vmem [resolvable:$true] %s145_s25 }
  0x10   : > { %p2113_p12 = scmp.ne.s32.totalorder %s2593_s1, %s2112_s28  ;;  %p2119_p5 = scmp.lt.u32.totalorder %s2112_s28, %s2593_s1 }
  0x11   : > { %p2350_p11 = pnand %p2052_p9, %p2596_p1 }
  0x13   : > { %p2114_p13 = pneg %p2350_p11 }
  0x15   : > { %p2115_p0 = pnand %p2114_p13, %p2113_p12 }
  0x17   : > { %p2116_p3 = pneg %p2115_p0 }
  0x19   : > { %p2121_p7 = pnand %p2119_p5, %p2116_p3 }
  0x1b   : > { %2124 = shalt.err (!%p2121_p7)
}
  0x1c   : > { %s2125_s6 = scalar_lea.vmem %s2343_s22, 30720  ;;  %p2133_p2 = scmp.lt.s32.totalorder %s2343_s22, %s2343_s22 }
  0x1d   : > { %p2126_p9 = scmp.ne.s32.totalorder %s2343_s22, %s2125_s6  ;;  %p2134_p12 = scmp.lt.s32.totalorder %s2125_s6, %s2125_s6 }
  0x1f   : > { %p2128_p10 = pnand %p2126_p9, %p2114_p13  ;;  %p2135_p0 = por %p2134_p12, %p2133_p2 }
  0x21   : > { %p2129_p1 = pneg %p2128_p10 }
  0x23   : > { %p2136_p6 = pnand %p2135_p0, %p2129_p1 }
  0x25   : > { %2139 = shalt.err (!%p2136_p6)
}
  0x26   : > { %s2272_s7 = smov 128   ;;  %s2273_s8 = smov 8  }
  0x27   : > { %2055 = dma.hbm_to_vmem [thread:$0]  (!%p2350_p11), %s2593_s1, 30720, %s2343_s22, [#allocation6], %s2272_s7, %s2272_s7, %s2273_s8  }
  0x28   : > { %s2140_s21 = scalar_lea.hbm %s2594_s2, 128 }
  0x29   : > { %p2141_p1 = scmp.ne.s32.totalorder %s2594_s2, %s2140_s21  ;;  %p2147_p10 = scmp.lt.u32.totalorder %s2140_s21, %s2594_s2 }
  0x2b   : > { %p2143_p2 = pnand %p2141_p1, %p2114_p13 }
  0x2d   : > { %p2144_p6 = pneg %p2143_p2 }
  0x2f   : > { %p2149_p3 = pnand %p2147_p10, %p2144_p6 }
  0x31   : > { %2152 = shalt.err (!%p2149_p3)
}
  0x32   : > { %s2153_s22 = scalar_lea.vmem %s2354_s25, 128  ;;  %p2161_p12 = scmp.lt.s32.totalorder %s2354_s25, %s2354_s25 }
  0x33   : > { %p2154_p5 = scmp.ne.s32.totalorder %s2354_s25, %s2153_s22  ;;  %p2162_p0 = scmp.lt.s32.totalorder %s2153_s22, %s2153_s22 }
  0x35   : > { %p2156_p7 = pnand %p2154_p5, %p2114_p13  ;;  %p2163_p1 = por %p2162_p0, %p2161_p12 }
  0x37   : > { %p2157_p9 = pneg %p2156_p7 }
  0x39   : > { %p2164_p2 = pnand %p2163_p1, %p2157_p9 }
  0x3b   : > { %2167 = shalt.err (!%p2164_p2)
}
  0x3c   : > { %2058 = dma.hbm_to_vmem [thread:$0]  (!%p2350_p11), %s2594_s2, 128, %s2354_s25, [#allocation6]  }
  0x3d   : > { %s2412_s4 = sadd.s32 1, %s2268_s15   ;;  %s27_s23 = sadd.s32 1, %s2264_s14 }
  0x3e   : > { %s24_s5 = ssub.s32 %s2268_s15, %s2412_s4  ;;  %p34_p13 = scmp.ne.s32.totalorder %s2264_s14, %s2260_s13 }
  0x3f   : > { %p25_p6 = scmp.eq.s32.totalorder %s24_s5, 0  ;;  %p35_p10 = scmp.eq.s32.totalorder %s2268_s15, 0 }
  0x40   : > { %p2603_p3 = scmp.eq.s32.totalorder %s2320_s16, 1  ;;  %p2069_p7 = scmp.lt.s32.totalorder %s2268_s15, 2 }
  0x41   : > { %s2428_s9 = scalar_select %p25_p6, %s2264_s14, %s27_s23  }
  0x42   : > { %p2422_p5 = por %p2603_p3, %p34_p13  ;;  %p36_p9 = por %p35_p10, %p34_p13 }
  0x43   : > { %s156_s10 = sand.u32 1, %s2264_s14   ;;  %s1333_s25 = sshll.u32 %s2268_s15, 8 }
  0x44   : > { %s2604_s6 = scalar_select %p2422_p5, 1, 0 }
  0x45   : > { %s1306_s11 = sshll.u32 %s156_s10, 4  ;;  %s2435_s24 = scalar_lea.hbm %s2592_s0, %s1333_s25 }
  0x46   : > { %s160_s26 = scalar_lea.vmem [#allocation2], %s1306_s11  ;;  %p2439_p11 = pnand %p2069_p7, %p36_p9 }
  0x47   : > { %s167_s27 = sshll.u32 %s160_s26, 4  ;;  %s2443_s22 = scalar_lea.sflag [#allocation3], %s156_s10  ;;  %s2437_s27 = int_to_ptr.vmem [resolvable:$true] %s167_s27 }
  0x48   : > { %s2168_s29 = scalar_lea.hbm %s2435_s24, 256  ;;  %p2170_p0 = pneg %p2439_p11 }
  0x49   : > { %p2169_p12 = scmp.ne.s32.totalorder %s2435_s24, %s2168_s29  ;;  %s2173_s5 = scalar_lea.hbm %s2592_s0, 512 }
  0x4a   : > { %p2174_p13 = scmp.lt.u32.totalorder %s2435_s24, %s2592_s0  ;;  %p2175_p6 = scmp.lt.u32.totalorder %s2173_s5, %s2168_s29 }
  0x4b   : > { %p2171_p1 = pnand %p2170_p0, %p2169_p12  ;;  %p2177_p3 = scmp.lt.u32.totalorder %s2168_s29, %s2435_s24 }
  0x4c   : > { %p2176_p10 = por %p2175_p6, %p2174_p13 }
  0x4d   : > { %p2172_p2 = pneg %p2171_p1 }
  0x4e   : > { %p2178_p7 = por %p2177_p3, %p2176_p10 }
  0x50   : > { %p2179_p9 = pnand %p2178_p7, %p2172_p2 }
  0x52   : > { %2182 = shalt.err (!%p2179_p9)
}
  0x53   : > { %s2183_s10 = scalar_lea.vmem %s2437_s27, 256  ;;  %s2274_s17 = smov [#allocation2]  }
  0x54   : > { %p2184_p12 = scmp.ne.s32.totalorder %s2437_s27, %s2183_s10  ;;  %s2188_s21 = sshll.u32 %s2274_s17, 4  ;;  %s2189_s21 = int_to_ptr.vmem [resolvable:$false] %s2188_s21 }
  0x55   : > { %s2190_s26 = scalar_lea.vmem %s2189_s21, 512  ;;  %p2191_p4 = scmp.lt.s32.totalorder %s2437_s27, %s2189_s21 }
  0x56   : > { %p2186_p1 = pnand %p2184_p12, %p2170_p0  ;;  %p2192_p13 = scmp.lt.s32.totalorder %s2190_s26, %s2183_s10 }
  0x58   : > { %p2187_p5 = pneg %p2186_p1  ;;  %p2193_p6 = por %p2192_p13, %p2191_p4 }
  0x5a   : > { %p2194_p10 = pnand %p2193_p6, %p2187_p5 }
  0x5c   : > { %2197 = shalt.err (!%p2194_p10)
}
  0x5d   : > { %2062 = dma.hbm_to_vmem [thread:$0]  (!%p2439_p11), %s2435_s24, 256, %s2437_s27, %s2443_s22, %s2272_s7, %s2272_s7, %s2273_s8  }
  0x5e   : > { %179 = sbr.rel (%p2339_p8) target bundleno = 1270 (0x4f6), region = 32  ;;  %s2477_s29 = sand.u32 (!%p2339_p8), 1, %s2260_s13  }
  0x5f   : > { %s1310_s30 = sshll.u32 (!%p2339_p8), %s2477_s29, 4  ;;  %s182_s23 = scalar_lea.sflag (!%p2339_p8), [#allocation3], %s2477_s29 }
  0x60   : > { %s2483_s28 = scalar_lea.vmem (!%p2339_p8), [#allocation2], %s1310_s30  ;;  %p2606_p4 = scmp.ne.s32.totalorder (!%p2339_p8), %s2599_s18, 0 }
  0x65   : > { %2243 = dma.done.wait (%p2606_p4), %s182_s23, 256  }
  0x66   : > { %2245 = vsyncadd (%p2606_p4), %s182_s23, 4294967040  ;;  %p2607_p5 = scmp.eq.s32.totalorder %s2320_s16, 0 }
  0x68   : > { %2247 = dma.done.wait (%p2607_p5), [#allocation6], 30848   ;;  %p2608_p8 = pmov %p2607_p5 }
  0x69   : > { %v250_v0 = vld [vmem:[#allocation5 + $0x80] sm:$0xff]  ;;  %v251_v1 = vld [vmem:[#allocation5 + $0x88] sm:$0xff]  ;;  %v252_v5 = vld [vmem:[#allocation5 + $0x90] sm:$0xff]  ;;  %vm227_vm0 = vcmask 1046528   ;;  %vm220_vm1 = vcmask 1040384   ;;  %vm443_vm3 = vcmask 1041408  }
  0x6a   : > { %2249 = vsyncadd (%p2608_p8), [#allocation6], 4294936448  ;;  %v234_v2 = vld [vmem:[#allocation5] sm:$0xff]  ;;  %v1752_v3 = vpack.c.bf16 %v251_v1, %v250_v0  ;;  %v235_v4 = vld [vmem:[#allocation5 + $0x8] sm:$0xff]  ;;  %vm450_vm5 = vcmask 1045504   ;;  %vm667_vm6 = vcmask 1043456  }
  0x6b   : > { %v253_v6 = vld [vmem:[#allocation5 + $0x98] sm:$0xff]  ;;  %v1754_v7 = vpack.c.bf16 %v235_v4, %v234_v2  ;;  %v266_v9 = vld [vmem:[#allocation5 + $0x100] sm:$0xff]  ;;  %v267_v10 = vld [vmem:[#allocation5 + $0x108] sm:$0xff]  ;;  %s215_s18 = scalar_lea.vmem [#allocation8], %s1310_s30  ;;  %s1334_s7 = sshll.u32 %s2320_s16, 8 }
  0x6c   : > { %v1756_v8 = vpack.c.bf16 %v253_v6, %v252_v5  ;;  %v236_v11 = vld [vmem:[#allocation5 + $0x10] sm:$0xff]  ;;  %1753 = vmatprep.subr.bf16.mxu0 %v1752_v3  ;;  %v1784_v12 = vpack.c.bf16 %v267_v10, %v266_v9  ;;  %v237_v13 = vld [vmem:[#allocation5 + $0x18] sm:$0xff]  ;;  %v254_v14 = vld [vmem:[#allocation5 + $0xa0] sm:$0xff]  ;;  %s1209_s20 = sshll.u32 %s215_s18, 4  ;;  %s2548_s27 = scalar_lea.hbm %s2595_s3, %s1334_s7  ;;  %s2543_s20 = int_to_ptr.vmem [resolvable:$true] %s1209_s20 }
  0x6d   : > { %v255_v15 = vld [vmem:[#allocation5 + $0xa8] sm:$0xff]  ;;  %1755 = vmatpush3.bf16.msra.mxu0 %v1754_v7  ;;  %v1758_v16 = vpack.c.bf16 %v237_v13, %v236_v11  ;;  %v268_v17 = vld [vmem:[#allocation5 + $0x110] sm:$0xff]  ;;  %v269_v18 = vld [vmem:[#allocation5 + $0x118] sm:$0xff]  ;;  %s1196_s22 = scalar_lea.sflag [#allocation4], %s2477_s29  ;;  %s2198_s5 = scalar_lea.vmem %s2543_s20, 256 }
  0x6e   : > { %1757 = vmatprep.subr.bf16.mxu0 %v1756_v8  ;;  %1785 = vmatprep.subr.bf16.mxu1 %v1784_v12  ;;  %v1760_v19 = vpack.c.bf16 %v255_v15, %v254_v14  ;;  %v1788_v20 = vpack.c.bf16 %v269_v18, %v268_v17  ;;  %v238_v21 = vld [vmem:[#allocation5 + $0x20] sm:$0xff]  ;;  %v239_v22 = vld [vmem:[#allocation5 + $0x28] sm:$0xff]  ;;  %v256_v23 = vld [vmem:[#allocation5 + $0xb0] sm:$0xff]  ;;  %p2199_p11 = scmp.ne.s32.totalorder %s2543_s20, %s2198_s5  ;;  %p2609_p0 = scmp.ne.s32.totalorder %s2604_s6, 0 }
  0x6f   : > { %1787 = vmatpush3.bf16.msra.mxu1 %v1784_v12  ;;  %v257_v24 = vld [vmem:[#allocation5 + $0xb8] sm:$0xff]  ;;  %v270_v25 = vld [vmem:[#allocation5 + $0x120] sm:$0xff]  ;;  %v271_v26 = vld [vmem:[#allocation5 + $0x128] sm:$0xff]  ;;  %v1762_v28 = vpack.c.bf16 %v239_v22, %v238_v21  ;;  %s2276_s16 = smov [#allocation8]  }
  0x70   : > { %1789 = vmatprep.subr.bf16.mxu1 %v1788_v20  ;;  %v1792_v27 = vpack.c.bf16 %v271_v26, %v270_v25  ;;  %v272_v29 = vld [vmem:[#allocation5 + $0x130] sm:$0xff]  ;;  %v273_v30 = vld [vmem:[#allocation5 + $0x138] sm:$0xff]  ;;  %v1764_v31 = vpack.c.bf16 %v257_v24, %v256_v23  ;;  %v258_v34 = vld [vmem:[#allocation5 + $0xc0] sm:$0xff]  ;;  %p2200_p2 = pnand %p2199_p11, %p2609_p0  ;;  %s2202_s11 = sshll.u32 %s2276_s16, 4  ;;  %s2203_s11 = int_to_ptr.vmem [resolvable:$false] %s2202_s11 }
  0x71   : > { %1759 = vmatpush3.bf16.msra.mxu0 %v1758_v16  ;;  %v240_v32 = vld [vmem:[#allocation5 + $0x30] sm:$0xff]  ;;  %v241_v33 = vld [vmem:[#allocation5 + $0x38] sm:$0xff]  ;;  %v259_v35 = vld [vmem:[#allocation5 + $0xc8] sm:$0xff]  ;;  %v1796_v36 = vpack.c.bf16 %v273_v30, %v272_v29  ;;  %s2204_s25 = scalar_lea.vmem %s2203_s11, 512  ;;  %p2205_p7 = scmp.lt.s32.totalorder %s2543_s20, %s2203_s11 }
  0x72   : > { %1761 = vmatprep.subr.bf16.mxu0 %v1760_v19  ;;  %v1766_v37 = vpack.c.bf16 %v241_v33, %v240_v32  ;;  %v274_v38 = vld [vmem:[#allocation5 + $0x140] sm:$0xff]  ;;  %v275_v39 = vld [vmem:[#allocation5 + $0x148] sm:$0xff]  ;;  %v1768_v40 = vpack.c.bf16 %v259_v35, %v258_v34  ;;  %v260_v43 = vld [vmem:[#allocation5 + $0xd0] sm:$0xff]  ;;  %p2201_p3 = pneg %p2200_p2  ;;  %p2206_p9 = scmp.lt.s32.totalorder %s2204_s25, %s2198_s5 }
  0x73   : > { %1791 = vmatpush3.bf16.msra.mxu1 %v1788_v20  ;;  %v242_v41 = vld [vmem:[#allocation5 + $0x40] sm:$0xff]  ;;  %v243_v42 = vld [vmem:[#allocation5 + $0x48] sm:$0xff]  ;;  %v261_v44 = vld [vmem:[#allocation5 + $0xd8] sm:$0xff]  ;;  %v1800_v45 = vpack.c.bf16 %v275_v39, %v274_v38 }
  0x74   : > { %1793 = vmatprep.subr.bf16.mxu1 %v1792_v27  ;;  %v2494_v46 = vld [vmem:[%s2483_s28] sm:$0xff]  ;;  %v1770_v47 = vpack.c.bf16 %v243_v42, %v242_v41  ;;  %v277_v49 = vld [vmem:[#allocation5 + $0x158] sm:$0xff]  ;;  %v1772_v52 = vpack.c.bf16 %v261_v44, %v260_v43  ;;  %v263_v57 = vld [vmem:[#allocation5 + $0xe8] sm:$0xff]  ;;  %p2207_p12 = por %p2206_p9, %p2205_p7 }
  0x75   : > { %1763 = vmatpush3.bf16.msra.mxu0 %v1762_v28  ;;  %v276_v48 = vld [vmem:[#allocation5 + $0x150] sm:$0xff]  ;;  %351 = vmatprep.mubr.f32.mxu0 %v2494_v46  ;;  %v2498_v50 = vld [vmem:[%s2483_s28 + $0x8] sm:$0xff]  ;;  %v228_v51 = vrot.slane %v2494_v46, 1  ;;  %v262_v56 = vld [vmem:[#allocation5 + $0xe0] sm:$0xff]  ;;  %v221_v22 = vrot.slane %v2494_v46, 7 }
  0x76   : > { %1765 = vmatprep.subr.bf16.mxu0 %v1764_v31  ;;  %v244_v53 = vld [vmem:[#allocation5 + $0x50] sm:$0xff]  ;;  %v245_v54 = vld [vmem:[#allocation5 + $0x58] sm:$0xff]  ;;  %v229_v55 = vrot.slane %v2498_v50, 1  ;;  %v1804_v58 = vpack.c.bf16 %v277_v49, %v276_v48  ;;  %v278_v61 = vld [vmem:[#allocation5 + $0x160] sm:$0xff]  ;;  %v1776_v63 = vpack.c.bf16 %v263_v57, %v262_v56  ;;  %v222_v24 = vrot.slane %v2498_v50, 7  ;;  %p2208_p1 = pnand %p2207_p12, %p2201_p3 }
  0x77   : > { %1795 = vmatpush3.bf16.msra.mxu1 %v1792_v27  ;;  %v1774_v60 = vpack.c.bf16 %v245_v54, %v244_v53  ;;  %v279_v62 = vld [vmem:[#allocation5 + $0x168] sm:$0xff]  ;;  %v246_v0 = vld [vmem:[#allocation5 + $0x60] sm:$0xff]  ;;  %v264_v2 = vld [vmem:[#allocation5 + $0xf0] sm:$0xff] }
  0x78   : > { %1797 = vmatprep.subr.bf16.mxu1 %v1796_v36  ;;  %v230_v59 = vsel %vm227_vm0, %v228_v51, %v229_v55  ;;  %v247_v1 = vld [vmem:[#allocation5 + $0x68] sm:$0xff]  ;;  %v265_v3 = vld [vmem:[#allocation5 + $0xf8] sm:$0xff]  ;;  %v1808_v4 = vpack.c.bf16 %v279_v62, %v278_v61  ;;  %v280_v6 = vld [vmem:[#allocation5 + $0x170] sm:$0xff]  ;;  %v223_v34 = vsel %vm220_vm1, %v221_v22, %v222_v24 }
  0x79   : > { %1767 = vmatpush3.bf16.msra.mxu0 %v1766_v37  ;;  %1609 = vmatprep.mubr.f32.mxu1 %v230_v59  ;;  %v1778_v5 = vpack.c.bf16 %v247_v1, %v246_v0  ;;  %v281_v7 = vld [vmem:[#allocation5 + $0x178] sm:$0xff]  ;;  %v1780_v8 = vpack.c.bf16 %v265_v3, %v264_v2  ;;  %v248_v9 = vld [vmem:[#allocation5 + $0x70] sm:$0xff]  ;;  %v474_v11 = vld [vmem:[#allocation5 + $0x200] sm:$0xff] }
  0x7a   : > { %1769 = vmatprep.subr.bf16.mxu0 %v1768_v40  ;;  %v249_v10 = vld [vmem:[#allocation5 + $0x78] sm:$0xff]  ;;  %v475_v12 = vld [vmem:[#allocation5 + $0x208] sm:$0xff]  ;;  %v1812_v13 = vpack.c.bf16 %v281_v7, %v280_v6  ;;  %v490_v15 = vld [vmem:[#allocation5 + $0x280] sm:$0xff] }
  0x7b   : > { %1799 = vmatpush3.bf16.msra.mxu1 %v1796_v36  ;;  %v1782_v14 = vpack.c.bf16 %v249_v10, %v248_v9  ;;  %v491_v16 = vld [vmem:[#allocation5 + $0x288] sm:$0xff]  ;;  %v1816_v17 = vpack.c.bf16 %v475_v12, %v474_v11  ;;  %v458_v18 = vld [vmem:[#allocation5 + $0x180] sm:$0xff]  ;;  %v476_v20 = vld [vmem:[#allocation5 + $0x210] sm:$0xff] }
  0x7c   : > { %1801 = vmatprep.subr.bf16.mxu1 %v1800_v45  ;;  %v459_v19 = vld [vmem:[#allocation5 + $0x188] sm:$0xff]  ;;  %v477_v21 = vld [vmem:[#allocation5 + $0x218] sm:$0xff]  ;;  %v1848_v23 = vpack.c.bf16 %v491_v16, %v490_v15  ;;  %vm1315_vm2 = vmneg %vm220_vm1 }
  0x7d   : > { %1771 = vmatpush3.bf16.msra.mxu0 %v1770_v47  ;;  %v1818_v25 = vpack.c.bf16 %v459_v19, %v458_v18  ;;  %v492_v26 = vld [vmem:[#allocation5 + $0x290] sm:$0xff]  ;;  %v493_v27 = vld [vmem:[#allocation5 + $0x298] sm:$0xff]  ;;  %v1820_v28 = vpack.c.bf16 %v477_v21, %v476_v20  ;;  %v478_v31 = vld [vmem:[#allocation5 + $0x220] sm:$0xff] }
  0x7e   : > { %1773 = vmatprep.subr.bf16.mxu0 %v1772_v52  ;;  %v460_v29 = vld [vmem:[#allocation5 + $0x190] sm:$0xff]  ;;  %v461_v30 = vld [vmem:[#allocation5 + $0x198] sm:$0xff]  ;;  %v479_v32 = vld [vmem:[#allocation5 + $0x228] sm:$0xff]  ;;  %v1852_v33 = vpack.c.bf16 %v493_v27, %v492_v26 }
  0x7f   : > { %1803 = vmatpush3.bf16.msra.mxu1 %v1800_v45  ;;  %v1822_v35 = vpack.c.bf16 %v461_v30, %v460_v29  ;;  %v494_v36 = vld [vmem:[#allocation5 + $0x2a0] sm:$0xff]  ;;  %v495_v37 = vld [vmem:[#allocation5 + $0x2a8] sm:$0xff]  ;;  %v1824_v38 = vpack.c.bf16 %v479_v32, %v478_v31  ;;  %v480_v41 = vld [vmem:[#allocation5 + $0x230] sm:$0xff] }
  0x80   : > { %1805 = vmatprep.subr.bf16.mxu1 %v1804_v58  ;;  %v462_v39 = vld [vmem:[#allocation5 + $0x1a0] sm:$0xff]  ;;  %v463_v40 = vld [vmem:[#allocation5 + $0x1a8] sm:$0xff]  ;;  %v481_v42 = vld [vmem:[#allocation5 + $0x238] sm:$0xff]  ;;  %v1856_v43 = vpack.c.bf16 %v495_v37, %v494_v36 }
  0x81   : > { %1775 = vmatpush3.bf16.msra.mxu0 %v1774_v60  ;;  %v1826_v44 = vpack.c.bf16 %v463_v40, %v462_v39  ;;  %v496_v45 = vld [vmem:[#allocation5 + $0x2b0] sm:$0xff]  ;;  %v497_v47 = vld [vmem:[#allocation5 + $0x2b8] sm:$0xff]  ;;  %v1828_v48 = vpack.c.bf16 %v481_v42, %v480_v41  ;;  %v482_v52 = vld [vmem:[#allocation5 + $0x240] sm:$0xff] }
  0x82   : > { %1777 = vmatprep.subr.bf16.mxu0 %v1776_v63  ;;  %v464_v49 = vld [vmem:[#allocation5 + $0x1b0] sm:$0xff]  ;;  %v465_v51 = vld [vmem:[#allocation5 + $0x1b8] sm:$0xff]  ;;  %v483_v53 = vld [vmem:[#allocation5 + $0x248] sm:$0xff]  ;;  %v1860_v54 = vpack.c.bf16 %v497_v47, %v496_v45 }
  0x83   : > { %1807 = vmatpush3.bf16.msra.mxu1 %v1804_v58  ;;  %v1832_v56 = vpack.c.bf16 %v483_v53, %v482_v52  ;;  %v466_v57 = vld [vmem:[#allocation5 + $0x1c0] sm:$0xff]  ;;  %v467_v58 = vld [vmem:[#allocation5 + $0x1c8] sm:$0xff]  ;;  %v484_v60 = vld [vmem:[#allocation5 + $0x250] sm:$0xff] }
  0x84   : > { %1809 = vmatprep.subr.bf16.mxu1 %v1808_v4  ;;  %v1834_v59 = vpack.c.bf16 %v467_v58, %v466_v57  ;;  %v485_v61 = vld [vmem:[#allocation5 + $0x258] sm:$0xff]  ;;  %v468_v63 = vld [vmem:[#allocation5 + $0x1d0] sm:$0xff]  ;;  %v498_v2 = vld [vmem:[#allocation5 + $0x2c0] sm:$0xff] }
  0x85   : > { %1779 = vmatpush3.bf16.msra.mxu0 %v1778_v5  ;;  %v1836_v62 = vpack.c.bf16 %v485_v61, %v484_v60  ;;  %v469_v0 = vld [vmem:[#allocation5 + $0x1d8] sm:$0xff]  ;;  %v499_v3 = vld [vmem:[#allocation5 + $0x2c8] sm:$0xff]  ;;  %v486_v5 = vld [vmem:[#allocation5 + $0x260] sm:$0xff] }
  0x86   : > { %1781 = vmatprep.subr.bf16.mxu0 %v1780_v8  ;;  %v1838_v1 = vpack.c.bf16 %v469_v0, %v468_v63  ;;  %v487_v6 = vld [vmem:[#allocation5 + $0x268] sm:$0xff]  ;;  %v470_v8 = vld [vmem:[#allocation5 + $0x1e0] sm:$0xff]  ;;  %v500_v11 = vld [vmem:[#allocation5 + $0x2d0] sm:$0xff] }
  0x87   : > { %1811 = vmatpush3.bf16.msra.mxu1 %v1808_v4  ;;  %v1864_v4 = vpack.c.bf16 %v499_v3, %v498_v2  ;;  %v1840_v7 = vpack.c.bf16 %v487_v6, %v486_v5  ;;  %v471_v9 = vld [vmem:[#allocation5 + $0x1e8] sm:$0xff]  ;;  %v501_v12 = vld [vmem:[#allocation5 + $0x2d8] sm:$0xff]  ;;  %v502_v20 = vld [vmem:[#allocation5 + $0x2e0] sm:$0xff] }
  0x88   : > { %1813 = vmatprep.subr.bf16.mxu1 %v1812_v13  ;;  %v1842_v10 = vpack.c.bf16 %v471_v9, %v470_v8  ;;  %v489_v15 = vld [vmem:[#allocation5 + $0x278] sm:$0xff]  ;;  %v503_v21 = vld [vmem:[#allocation5 + $0x2e8] sm:$0xff]  ;;  %v693_v26 = vld [vmem:[#allocation5 + $0x380] sm:$0xff] }
  0x89   : > { %1783 = vmatpush3.bf16.msra.mxu0 %v1782_v14  ;;  %v488_v14 = vld [vmem:[#allocation5 + $0x270] sm:$0xff]  ;;  %v473_v18 = vld [vmem:[#allocation5 + $0x1f8] sm:$0xff]  ;;  %v694_v27 = vld [vmem:[#allocation5 + $0x388] sm:$0xff] }
  0x8a   : > { %1817 = vmatprep.subr.bf16.mxu0 %v1816_v17  ;;  %v1844_v16 = vpack.c.bf16 %v489_v15, %v488_v14  ;;  %v472_v17 = vld [vmem:[#allocation5 + $0x1f0] sm:$0xff]  ;;  %v505_v24 = vld [vmem:[#allocation5 + $0x2f8] sm:$0xff]  ;;  %v709_v29 = vld [vmem:[#allocation5 + $0x400] sm:$0xff] }
  0x8b   : > { %1815 = vmatpush3.bf16.msra.mxu1 %v1812_v13  ;;  %v1868_v13 = vpack.c.bf16 %v501_v12, %v500_v11  ;;  %v1846_v19 = vpack.c.bf16 %v473_v18, %v472_v17  ;;  %v710_v30 = vld [vmem:[#allocation5 + $0x408] sm:$0xff]  ;;  %v695_v45 = vld [vmem:[#allocation5 + $0x390] sm:$0xff]  ;;  %v696_v47 = vld [vmem:[#allocation5 + $0x398] sm:$0xff] }
  0x8c   : > { %1316 = vmatmul.mubr.msk.f32.vlgmr.msra.gmra.mrb[0].mxu0 %vm1315_vm2, %v221_v22  ;;  %1849 = vmatprep.subr.bf16.mxu1 %v1848_v23  ;;  %v1872_v22 = vpack.c.bf16 %v503_v21, %v502_v20  ;;  %v1912_v31 = vpack.c.bf16 %v710_v30, %v709_v29  ;;  %vm1319_vm4 = vmneg %vm443_vm3  ;;  %v697_v58 = vld [vmem:[#allocation5 + $0x3a0] sm:$0xff]  ;;  %v711_v60 = vld [vmem:[#allocation5 + $0x410] sm:$0xff] }
  0x8d   : > { %356 = vmatprep.mubr.f32.mxu0 %v2498_v50  ;;  %1819 = vmatpush3.bf16.msra.mxu0 %v1818_v25  ;;  %v712_v61 = vld [vmem:[#allocation5 + $0x418] sm:$0xff]  ;;  %v681_v3 = vld [vmem:[#allocation5 + $0x320] sm:$0xff]  ;;  %v699_v8 = vld [vmem:[#allocation5 + $0x3b0] sm:$0xff] }
  0x8e   : > { %1610 = vmatmul.mubr.msk.f32.vlgmr.msra.gmra.mrb[0].mxu1 %vm227_vm0, %v229_v55  ;;  %1821 = vmatprep.subr.bf16.mxu0 %v1820_v28  ;;  %v1830_v55 = vpack.c.bf16 %v465_v51, %v464_v49  ;;  %v1880_v28 = vpack.c.bf16 %v694_v27, %v693_v26  ;;  %v700_v9 = vld [vmem:[#allocation5 + $0x3b8] sm:$0xff]  ;;  %v714_v11 = vld [vmem:[#allocation5 + $0x428] sm:$0xff]  ;;  %v683_v14 = vld [vmem:[#allocation5 + $0x330] sm:$0xff] }
  0x8f   : > { %1851 = vmatpush3.bf16.msra.mxu1 %v1848_v23  ;;  %v504_v23 = vld [vmem:[#allocation5 + $0x2f0] sm:$0xff]  ;;  %v684_v15 = vld [vmem:[#allocation5 + $0x338] sm:$0xff]  ;;  %v701_v17 = vld [vmem:[#allocation5 + $0x3c0] sm:$0xff] }
  0x90   : > { %357 = vmatmul.mubr.f32.gmra.mrb[2].mxu0 %v223_v34  ;;  %1853 = vmatprep.subr.bf16.mxu1 %v1852_v33  ;;  %v1876_v25 = vpack.c.bf16 %v505_v24, %v504_v23  ;;  %v1314_v34 = vld [vmem:[#allocation7] ss:$0 sm:$0xff]  ;;  %v702_v18 = vld [vmem:[#allocation5 + $0x3c8] sm:$0xff]  ;;  %v716_v20 = vld [vmem:[#allocation5 + $0x438] sm:$0xff]  ;;  %v1894_v21 = vpack.c.bf16 %v684_v15, %v683_v14 }
  0x91   : > { %1823 = vmatpush3.bf16.msra.mxu0 %v1822_v35  ;;  %v685_v23 = vld [vmem:[#allocation5 + $0x340] sm:$0xff]  ;;  %v686_v24 = vld [vmem:[#allocation5 + $0x348] sm:$0xff]  ;;  %v703_v27 = vld [vmem:[#allocation5 + $0x3d0] sm:$0xff] }
  0x92   : > { %1825 = vmatprep.subr.bf16.mxu0 %v1824_v38  ;;  %v1898_v26 = vpack.c.bf16 %v686_v24, %v685_v23  ;;  %v687_v30 = vld [vmem:[#allocation5 + $0x350] sm:$0xff]  ;;  %v885_v14 = vld [vmem:[#allocation5 + $0x480] sm:$0xff]  ;;  %v886_v15 = vld [vmem:[#allocation5 + $0x488] sm:$0xff] }
  0x93   : > { %1855 = vmatpush3.bf16.msra.mxu1 %v1852_v33  ;;  %vm1323_vm7 = vmneg %vm667_vm6 }
  0x94   : > { %1857 = vmatprep.subr.bf16.mxu1 %v1856_v43 }
  0x95   : > { %1827 = vmatpush3.bf16.msra.mxu0 %v1826_v44  ;;  %v678_v44 = vld [vmem:[#allocation5 + $0x308] sm:$0xff] }
  0x96   : > { %1829 = vmatprep.subr.bf16.mxu0 %v1828_v48 }
  0x97   : > { %1859 = vmatpush3.bf16.msra.mxu1 %v1856_v43  ;;  %v677_v43 = vld [vmem:[#allocation5 + $0x300] sm:$0xff] }
  0x98   : > { %1861 = vmatprep.subr.bf16.mxu1 %v1860_v54  ;;  %v1882_v51 = vpack.c.bf16 %v678_v44, %v677_v43  ;;  %v720_v43 = vld [vmem:[#allocation5 + $0x458] sm:$0xff] }
  0x99   : > { %1831 = vmatpush3.bf16.msra.mxu0 %v1830_v55  ;;  %v679_v55 = vld [vmem:[#allocation5 + $0x310] sm:$0xff] }
  0x9a   : > { %1833 = vmatprep.subr.bf16.mxu0 %v1832_v56  ;;  %v680_v56 = vld [vmem:[#allocation5 + $0x318] sm:$0xff] }
  0x9b   : > { %1863 = vmatpush3.bf16.msra.mxu1 %v1860_v54  ;;  %v1884_v54 = vpack.c.bf16 %v696_v47, %v695_v45  ;;  %v707_v45 = vld [vmem:[#allocation5 + $0x3f0] sm:$0xff]  ;;  %v708_v47 = vld [vmem:[#allocation5 + $0x3f8] sm:$0xff] }
  0x9c   : > { %1865 = vmatprep.subr.bf16.mxu1 %v1864_v4 }
  0x9d   : > { %1835 = vmatpush3.bf16.msra.mxu0 %v1834_v59  ;;  %v698_v59 = vld [vmem:[#allocation5 + $0x3a8] sm:$0xff] }
  0x9e   : > { %1837 = vmatprep.subr.bf16.mxu0 %v1836_v62  ;;  %v1888_v2 = vpack.c.bf16 %v698_v59, %v697_v58  ;;  %v723_v58 = vld [vmem:[#allocation5 + $0x470] sm:$0xff]  ;;  %v724_v59 = vld [vmem:[#allocation5 + $0x478] sm:$0xff] }
  0x9f   : > { %1867 = vmatpush3.bf16.msra.mxu1 %v1864_v4  ;;  %v682_v4 = vld [vmem:[#allocation5 + $0x328] sm:$0xff] }
  0xa0   : > { %1869 = vmatprep.subr.bf16.mxu1 %v1868_v13  ;;  %v1890_v12 = vpack.c.bf16 %v682_v4, %v681_v3 }
  0xa1   : > { %1839 = vmatpush3.bf16.msra.mxu0 %v1838_v1  ;;  %v1886_v1 = vpack.c.bf16 %v680_v56, %v679_v55  ;;  %v722_v55 = vld [vmem:[#allocation5 + $0x468] sm:$0xff] }
  0xa2   : > { %1841 = vmatprep.subr.bf16.mxu0 %v1840_v7  ;;  %v1916_v7 = vpack.c.bf16 %v712_v61, %v711_v60  ;;  %v1940_v60 = vpack.c.bf16 %v724_v59, %v723_v58  ;;  %v901_v61 = vld [vmem:[#allocation5 + $0x500] sm:$0xff]  ;;  %v894_v58 = vld [vmem:[#allocation5 + $0x4c8] sm:$0xff] }
  0xa3   : > { %1871 = vmatpush3.bf16.msra.mxu1 %v1868_v13  ;;  %v1892_v13 = vpack.c.bf16 %v700_v9, %v699_v8 }
  0xa4   : > { %1873 = vmatprep.subr.bf16.mxu1 %v1872_v22 }
  0xa5   : > { %1843 = vmatpush3.bf16.msra.mxu0 %v1842_v10  ;;  %v713_v10 = vld [vmem:[#allocation5 + $0x420] sm:$0xff] }
  0xa6   : > { %1845 = vmatprep.subr.bf16.mxu0 %v1844_v16  ;;  %v1920_v16 = vpack.c.bf16 %v714_v11, %v713_v10 }
  0xa7   : > { %1875 = vmatpush3.bf16.msra.mxu1 %v1872_v22  ;;  %v1896_v22 = vpack.c.bf16 %v702_v18, %v701_v17  ;;  %v903_v17 = vld [vmem:[#allocation5 + $0x510] sm:$0xff]  ;;  %v904_v18 = vld [vmem:[#allocation5 + $0x518] sm:$0xff] }
  0xa8   : > { %1877 = vmatprep.subr.bf16.mxu1 %v1876_v25 }
  0xa9   : > { %1847 = vmatpush3.bf16.msra.mxu0 %v1846_v19  ;;  %v715_v19 = vld [vmem:[#allocation5 + $0x430] sm:$0xff] }
  0xaa   : > { %1881 = vmatprep.subr.bf16.mxu0 %v1880_v28  ;;  %v704_v28 = vld [vmem:[#allocation5 + $0x3d8] sm:$0xff] }
  0xab   : > { %1879 = vmatpush3.bf16.msra.mxu1 %v1876_v25  ;;  %v1924_v25 = vpack.c.bf16 %v716_v20, %v715_v19  ;;  %v1900_v29 = vpack.c.bf16 %v704_v28, %v703_v27  ;;  %v888_v27 = vld [vmem:[#allocation5 + $0x498] sm:$0xff] }
  0xac   : > { %1913 = vmatprep.subr.bf16.mxu1 %v1912_v31 }
 0x15f   : > { %v1367_v32 = vpop.f32.mrb[0].mxu0 }
 0x160   : > { %v1368_v33 = vpop.f32.mrb[1].mxu0 }
 0x161   : > { %v1369_v35 = vadd.f32 %v1368_v33, %v1367_v32  ;;  %v1611_v36 = vpop.f32.mrb[0].mxu1  ;;  %v717_v32 = vld [vmem:[#allocation5 + $0x440] sm:$0xff] }
 0x162   : > { %v428_v37 = vpop.f32.mrb[1].mxu1 }
 0x163   : > { %v1370_v38 = vpop.f32.mrb[2].mxu0  ;;  %v354_v39 = vadd.f32 %v1369_v35, %v1314_v34 }
 0x164   : > { %v1371_v40 = vpop.f32.mrb[3].mxu0 }
 0x165   : > { %v1372_v41 = vadd.f32 %v1371_v40, %v1370_v38  ;;  %v429_v42 = vadd.f32 %v428_v37, %v354_v39  ;;  %v706_v37 = vld [vmem:[#allocation5 + $0x3e8] sm:$0xff]  ;;  %v689_v39 = vld [vmem:[#allocation5 + $0x360] sm:$0xff] }
 0x166   : > { %v690_v40 = vld [vmem:[#allocation5 + $0x368] sm:$0xff] }
 0x167   : > { %v359_v48 = vadd.f32 %v1372_v41, %v1314_v34  ;;  %v2513_v49 = vmax.f32 %v429_v42, 0.0  ;;  %v718_v34 = vld [vmem:[#allocation5 + $0x448] sm:$0xff]  ;;  %v719_v41 = vld [vmem:[#allocation5 + $0x450] sm:$0xff]  ;;  %v1906_v42 = vpack.c.bf16 %v690_v40, %v689_v39  ;;  %v921_v40 = vld [vmem:[#allocation5 + $0x5a0] sm:$0xff] }
 0x168   : > { %v1928_v35 = vpack.c.bf16 %v718_v34, %v717_v32  ;;  %v1932_v44 = vpack.c.bf16 %v720_v43, %v719_v41  ;;  %v922_v41 = vld [vmem:[#allocation5 + $0x5a8] sm:$0xff] }
 0x169   : > { %v434_v52 = vadd.f32 %v1611_v36, %v359_v48  ;;  %v444_v53 = vrot.slane %v2513_v49, 6  ;;  %575 = vmatprep.mubr.f32.mxu0 %v2513_v49  ;;  %v451_v63 = vrot.slane %v2513_v49, 2  ;;  %v705_v36 = vld [vmem:[#allocation5 + $0x3e0] sm:$0xff]  ;;  %v1908_v48 = vpack.c.bf16 %v708_v47, %v707_v45  ;;  %v892_v45 = vld [vmem:[#allocation5 + $0x4b8] sm:$0xff] }
 0x16a   : > { %v1904_v38 = vpack.c.bf16 %v706_v37, %v705_v36  ;;  %v439_v19 = vadd.f32 %v2513_v49, %v2494_v46  ;;  %v919_v46 = vld [vmem:[#allocation5 + $0x590] sm:$0xff]  ;;  %v920_v49 = vld [vmem:[#allocation5 + $0x598] sm:$0xff]  ;;  %v889_v36 = vld [vmem:[#allocation5 + $0x4a0] sm:$0xff]  ;;  %v1984_v47 = vpack.c.bf16 %v922_v41, %v921_v40 }
 0x16b   : > { %v2518_v57 = vmax.f32 %v434_v52, 0.0  ;;  %1320 = vmatmul.mubr.msk.f32.vlgmr.msra.gmra.mrb[4].mxu0 %vm1319_vm4, %v444_v53  ;;  %v692_v52 = vld [vmem:[#allocation5 + $0x378] sm:$0xff]  ;;  %v890_v37 = vld [vmem:[#allocation5 + $0x4a8] sm:$0xff]  ;;  %v1980_v39 = vpack.c.bf16 %v920_v49, %v919_v46  ;;  %v1322_v49 = vld [vmem:[#allocation7 + $0x2] ss:$0 sm:$0xff] }
 0x16c   : > { %1883 = vmatpush3.bf16.msra.mxu0 %v1882_v51  ;;  %v691_v51 = vld [vmem:[#allocation5 + $0x370] sm:$0xff]  ;;  %v1096_v41 = vld [vmem:[#allocation5 + $0x698] sm:$0xff] }
 0x16d   : > { %580 = vmatprep.mubr.f32.mxu0 %v2518_v57  ;;  %v445_v62 = vrot.slane %v2518_v57, 6  ;;  %v452_v0 = vrot.slane %v2518_v57, 2  ;;  %1885 = vmatprep.subr.bf16.mxu0 %v1884_v54  ;;  %v1910_v54 = vpack.c.bf16 %v692_v52, %v691_v51  ;;  %v440_v28 = vadd.f32 %v2518_v57, %v2498_v50  ;;  %v907_v50 = vld [vmem:[#allocation5 + $0x530] sm:$0xff]  ;;  %v908_v57 = vld [vmem:[#allocation5 + $0x538] sm:$0xff]  ;;  %v910_v51 = vld [vmem:[#allocation5 + $0x548] sm:$0xff] }
 0x16e   : > { %v1956_v43 = vpack.c.bf16 %v908_v57, %v907_v50  ;;  %v923_v52 = vld [vmem:[#allocation5 + $0x5b0] sm:$0xff] }
 0x16f   : > { %v446_v5 = vsel %vm443_vm3, %v444_v53, %v445_v62  ;;  %v453_v6 = vsel %vm450_vm5, %v451_v63, %v452_v0  ;;  %v721_v53 = vld [vmem:[#allocation5 + $0x460] sm:$0xff]  ;;  %v902_v62 = vld [vmem:[#allocation5 + $0x508] sm:$0xff]  ;;  %v1095_v40 = vld [vmem:[#allocation5 + $0x690] sm:$0xff] }
 0x170   : > { %581 = vmatmul.mubr.f32.gmra.mrb[6].mxu0 %v446_v5  ;;  %1644 = vmatprep.mubr.f32.mxu1 %v453_v6  ;;  %v1936_v56 = vpack.c.bf16 %v722_v55, %v721_v53  ;;  %v1944_v63 = vpack.c.bf16 %v902_v62, %v901_v61  ;;  %v1318_v6 = vld [vmem:[#allocation7 + $0x1] ss:$0 sm:$0xff]  ;;  %v924_v53 = vld [vmem:[#allocation5 + $0x5b8] sm:$0xff]  ;;  %v911_v61 = vld [vmem:[#allocation5 + $0x550] sm:$0xff] }
 0x171   : > { %1645 = vmatmul.mubr.msk.f32.vlgmr.msra.gmra.mrb[2].mxu1 %vm450_vm5, %v452_v0  ;;  %1887 = vmatpush3.bf16.msra.mxu0 %v1886_v1  ;;  %v917_v0 = vld [vmem:[#allocation5 + $0x580] sm:$0xff]  ;;  %v918_v1 = vld [vmem:[#allocation5 + $0x588] sm:$0xff]  ;;  %v1988_v59 = vpack.c.bf16 %v924_v53, %v923_v52  ;;  %v912_v62 = vld [vmem:[#allocation5 + $0x558] sm:$0xff]  ;;  %v2275_v52 = vmov 0.0  }
 0x172   : > { %1915 = vmatpush3.bf16.msra.mxu1 %v1912_v31  ;;  %1889 = vmatprep.subr.bf16.mxu0 %v1888_v2  ;;  %v688_v31 = vld [vmem:[#allocation5 + $0x358] sm:$0xff]  ;;  %v1976_v2 = vpack.c.bf16 %v918_v1, %v917_v0  ;;  %v1964_v0 = vpack.c.bf16 %v912_v62, %v911_v61  ;;  %v926_v1 = vld [vmem:[#allocation5 + $0x5c8] sm:$0xff] }
 0x173   : > { %1917 = vmatprep.subr.bf16.mxu1 %v1916_v7  ;;  %v1902_v33 = vpack.c.bf16 %v688_v31, %v687_v30  ;;  %v905_v30 = vld [vmem:[#allocation5 + $0x520] sm:$0xff]  ;;  %v906_v31 = vld [vmem:[#allocation5 + $0x528] sm:$0xff]  ;;  %v1104_v61 = vld [vmem:[#allocation5 + $0x6d8] sm:$0xff] }
 0x175   : > { %1891 = vmatpush3.bf16.msra.mxu0 %v1890_v12 }
 0x176   : > { %1919 = vmatpush3.bf16.msra.mxu1 %v1916_v7  ;;  %1893 = vmatprep.subr.bf16.mxu0 %v1892_v13 }
 0x177   : > { %1921 = vmatprep.subr.bf16.mxu1 %v1920_v16 }
 0x179   : > { %1895 = vmatpush3.bf16.msra.mxu0 %v1894_v21 }
 0x17a   : > { %1923 = vmatpush3.bf16.msra.mxu1 %v1920_v16  ;;  %1897 = vmatprep.subr.bf16.mxu0 %v1896_v22  ;;  %v1946_v22 = vpack.c.bf16 %v886_v15, %v885_v14  ;;  %v915_v15 = vld [vmem:[#allocation5 + $0x570] sm:$0xff] }
 0x17b   : > { %1925 = vmatprep.subr.bf16.mxu1 %v1924_v25 }
 0x17d   : > { %1899 = vmatpush3.bf16.msra.mxu0 %v1898_v26  ;;  %v887_v26 = vld [vmem:[#allocation5 + $0x490] sm:$0xff] }
 0x17e   : > { %1927 = vmatpush3.bf16.msra.mxu1 %v1924_v25  ;;  %1901 = vmatprep.subr.bf16.mxu0 %v1900_v29  ;;  %v1948_v25 = vpack.c.bf16 %v904_v18, %v903_v17  ;;  %v1950_v34 = vpack.c.bf16 %v888_v27, %v887_v26  ;;  %v929_v17 = vld [vmem:[#allocation5 + $0x5e0] sm:$0xff]  ;;  %v932_v26 = vld [vmem:[#allocation5 + $0x5f8] sm:$0xff] }
 0x17f   : > { %1929 = vmatprep.subr.bf16.mxu1 %v1928_v35 }
 0x181   : > { %1903 = vmatpush3.bf16.msra.mxu0 %v1902_v33 }
 0x182   : > { %1931 = vmatpush3.bf16.msra.mxu1 %v1928_v35  ;;  %1905 = vmatprep.subr.bf16.mxu0 %v1904_v38  ;;  %v1952_v35 = vpack.c.bf16 %v906_v31, %v905_v30 }
 0x183   : > { %1933 = vmatprep.subr.bf16.mxu1 %v1932_v44 }
 0x185   : > { %1907 = vmatpush3.bf16.msra.mxu0 %v1906_v42  ;;  %v1954_v42 = vpack.c.bf16 %v890_v37, %v889_v36 }
 0x186   : > { %1935 = vmatpush3.bf16.msra.mxu1 %v1932_v44  ;;  %1909 = vmatprep.subr.bf16.mxu0 %v1908_v48  ;;  %v891_v44 = vld [vmem:[#allocation5 + $0x4b0] sm:$0xff]  ;;  %v909_v48 = vld [vmem:[#allocation5 + $0x540] sm:$0xff] }
 0x187   : > { %1937 = vmatprep.subr.bf16.mxu1 %v1936_v56  ;;  %v1960_v55 = vpack.c.bf16 %v910_v51, %v909_v48 }
 0x189   : > { %1911 = vmatpush3.bf16.msra.mxu0 %v1910_v54  ;;  %v1958_v54 = vpack.c.bf16 %v892_v45, %v891_v44  ;;  %v2012_v44 = vpack.c.bf16 %v1096_v41, %v1095_v40  ;;  %v1097_v45 = vld [vmem:[#allocation5 + $0x6a0] sm:$0xff] }
 0x18a   : > { %1939 = vmatpush3.bf16.msra.mxu1 %v1936_v56  ;;  %1945 = vmatprep.subr.bf16.mxu0 %v1944_v63  ;;  %v893_v56 = vld [vmem:[#allocation5 + $0x4c0] sm:$0xff] }
 0x18b   : > { %1941 = vmatprep.subr.bf16.mxu1 %v1940_v60  ;;  %v925_v63 = vld [vmem:[#allocation5 + $0x5c0] sm:$0xff] }
 0x18e   : > { %1943 = vmatpush3.bf16.msra.mxu1 %v1940_v60  ;;  %v1962_v60 = vpack.c.bf16 %v894_v58, %v893_v56  ;;  %v1100_v56 = vld [vmem:[#allocation5 + $0x6b8] sm:$0xff] }
 0x18f   : > { %1977 = vmatprep.subr.bf16.mxu1 %v1976_v2 }
 0x23e   : > { %v1423_v3 = vpop.f32.mrb[4].mxu0 }
 0x23f   : > { %v1424_v4 = vpop.f32.mrb[5].mxu0 }
 0x240   : > { %v1425_v5 = vadd.f32 %v1424_v4, %v1423_v3  ;;  %v896_v3 = vld [vmem:[#allocation5 + $0x4d8] sm:$0xff]  ;;  %v1992_v4 = vpack.c.bf16 %v926_v1, %v925_v63  ;;  %v1105_v63 = vld [vmem:[#allocation5 + $0x6e0] sm:$0xff] }
 0x242   : > { %v578_v10 = vadd.f32 %v1425_v5, %v1318_v6 }
 0x243   : > { %v1426_v7 = vpop.f32.mrb[6].mxu0 }
 0x244   : > { %v1427_v8 = vpop.f32.mrb[7].mxu0  ;;  %v1646_v9 = vpop.f32.mrb[2].mxu1 }
 0x245   : > { %v1428_v11 = vadd.f32 %v1427_v8, %v1426_v7  ;;  %v652_v12 = vpop.f32.mrb[3].mxu1  ;;  %v914_v7 = vld [vmem:[#allocation5 + $0x568] sm:$0xff]  ;;  %v927_v8 = vld [vmem:[#allocation5 + $0x5d0] sm:$0xff] }
 0x246   : > { %v653_v13 = vadd.f32 %v652_v12, %v578_v10  ;;  %v928_v10 = vld [vmem:[#allocation5 + $0x5d8] sm:$0xff]  ;;  %v898_v12 = vld [vmem:[#allocation5 + $0x4e8] sm:$0xff] }
 0x247   : > { %v583_v16 = vadd.f32 %v1428_v11, %v1318_v6  ;;  %v913_v6 = vld [vmem:[#allocation5 + $0x560] sm:$0xff] }
 0x248   : > { %v661_v20 = vmax.f32 %v653_v13, 0.0  ;;  %v897_v11 = vld [vmem:[#allocation5 + $0x4e0] sm:$0xff]  ;;  %v1996_v13 = vpack.c.bf16 %v928_v10, %v927_v8 }
 0x249   : > { %v658_v21 = vadd.f32 %v1646_v9, %v583_v16  ;;  %v1968_v9 = vpack.c.bf16 %v914_v7, %v913_v6  ;;  %v1970_v14 = vpack.c.bf16 %v898_v12, %v897_v11  ;;  %v916_v16 = vld [vmem:[#allocation5 + $0x578] sm:$0xff]  ;;  %v1326_v7 = vld [vmem:[#allocation7 + $0x3] ss:$0 sm:$0xff] }
 0x24a   : > { %v2530_v23 = vadd.f32 %v661_v20, %v439_v19  ;;  %v668_v24 = vrot.slane %v661_v20, 4  ;;  %794 = vmatprep.mubr.f32.mxu0 %v661_v20  ;;  %v1972_v18 = vpack.c.bf16 %v916_v16, %v915_v15  ;;  %v930_v19 = vld [vmem:[#allocation5 + $0x5e8] sm:$0xff]  ;;  %v899_v20 = vld [vmem:[#allocation5 + $0x4f0] sm:$0xff] }
 0x24b   : > { %v662_v29 = vmax.f32 %v658_v21, 0.0  ;;  %v900_v21 = vld [vmem:[#allocation5 + $0x4f8] sm:$0xff] }
 0x24c   : > { %1324 = vmatmul.mubr.msk.f32.vlgmr.msra.gmra.mrb[8].mxu0 %vm1323_vm7, %v668_v24 }
 0x24d   : > { %v2534_v32 = vadd.f32 %v662_v29, %v440_v28  ;;  %v669_v33 = vrot.slane %v662_v29, 4  ;;  %799 = vmatprep.mubr.f32.mxu0 %v662_v29  ;;  %1947 = vmatpush3.bf16.msra.mxu0 %v1946_v22  ;;  %v2000_v22 = vpack.c.bf16 %v930_v19, %v929_v17  ;;  %v1093_v28 = vld [vmem:[#allocation5 + $0x680] sm:$0xff]  ;;  %v1094_v29 = vld [vmem:[#allocation5 + $0x688] sm:$0xff] }
 0x24e   : > { %1949 = vmatprep.subr.bf16.mxu0 %v1948_v25  ;;  %v931_v25 = vld [vmem:[#allocation5 + $0x5f0] sm:$0xff]  ;;  %v2008_v30 = vpack.c.bf16 %v1094_v29, %v1093_v28 }
 0x24f   : > { %v670_v38 = vsel %vm667_vm6, %v668_v24, %v669_v33  ;;  %v1974_v24 = vpack.c.bf16 %v900_v21, %v899_v20  ;;  %v2004_v27 = vpack.c.bf16 %v932_v26, %v931_v25 }
 0x250   : > { %800 = vmatmul.mubr.f32.gmra.mrb[10].mxu0 %v670_v38  ;;  %1679 = vmatprep.mubr.f32.mxu1 %v670_v38 }
 0x251   : > { %1680 = vmatmul.mubr.msk.f32.vlgmr.msra.gmra.mrb[4].mxu1 %vm667_vm6, %v669_v33  ;;  %1951 = vmatpush3.bf16.msra.mxu0 %v1950_v34 }
 0x252   : > { %1979 = vmatpush3.bf16.msra.mxu1 %v1976_v2  ;;  %1953 = vmatprep.subr.bf16.mxu0 %v1952_v35  ;;  %v895_v2 = vld [vmem:[#allocation5 + $0x4d0] sm:$0xff] }
 0x253   : > { %1981 = vmatprep.subr.bf16.mxu1 %v1980_v39  ;;  %v1966_v5 = vpack.c.bf16 %v896_v3, %v895_v2  ;;  %v1107_v2 = vld [vmem:[#allocation5 + $0x6f0] sm:$0xff]  ;;  %v1108_v3 = vld [vmem:[#allocation5 + $0x6f8] sm:$0xff] }
 0x255   : > { %1955 = vmatpush3.bf16.msra.mxu0 %v1954_v42 }
 0x256   : > { %1983 = vmatpush3.bf16.msra.mxu1 %v1980_v39  ;;  %1957 = vmatprep.subr.bf16.mxu0 %v1956_v43 }
 0x257   : > { %1985 = vmatprep.subr.bf16.mxu1 %v1984_v47 }
 0x259   : > { %1959 = vmatpush3.bf16.msra.mxu0 %v1958_v54 }
 0x25a   : > { %1987 = vmatpush3.bf16.msra.mxu1 %v1984_v47  ;;  %1961 = vmatprep.subr.bf16.mxu0 %v1960_v55  ;;  %v1098_v47 = vld [vmem:[#allocation5 + $0x6a8] sm:$0xff]  ;;  %v1099_v55 = vld [vmem:[#allocation5 + $0x6b0] sm:$0xff] }
 0x25b   : > { %1989 = vmatprep.subr.bf16.mxu1 %v1988_v59  ;;  %v2016_v54 = vpack.c.bf16 %v1098_v47, %v1097_v45  ;;  %v2020_v58 = vpack.c.bf16 %v1100_v56, %v1099_v55 }
 0x25d   : > { %1963 = vmatpush3.bf16.msra.mxu0 %v1962_v60  ;;  %v1102_v60 = vld [vmem:[#allocation5 + $0x6c8] sm:$0xff] }
 0x25e   : > { %1991 = vmatpush3.bf16.msra.mxu1 %v1988_v59  ;;  %1965 = vmatprep.subr.bf16.mxu0 %v1964_v0  ;;  %v1101_v59 = vld [vmem:[#allocation5 + $0x6c0] sm:$0xff]  ;;  %v1106_v0 = vld [vmem:[#allocation5 + $0x6e8] sm:$0xff] }
 0x25f   : > { %1993 = vmatprep.subr.bf16.mxu1 %v1992_v4  ;;  %v2032_v1 = vpack.c.bf16 %v1106_v0, %v1105_v63 }
 0x261   : > { %1967 = vmatpush3.bf16.msra.mxu0 %v1966_v5 }
 0x262   : > { %1995 = vmatpush3.bf16.msra.mxu1 %v1992_v4  ;;  %1969 = vmatprep.subr.bf16.mxu0 %v1968_v9  ;;  %v2036_v4 = vpack.c.bf16 %v1108_v3, %v1107_v2 }
 0x263   : > { %1997 = vmatprep.subr.bf16.mxu1 %v1996_v13 }
 0x265   : > { %1971 = vmatpush3.bf16.msra.mxu0 %v1970_v14 }
 0x266   : > { %1999 = vmatpush3.bf16.msra.mxu1 %v1996_v13  ;;  %1973 = vmatprep.subr.bf16.mxu0 %v1972_v18 }
 0x267   : > { %2001 = vmatprep.subr.bf16.mxu1 %v2000_v22 }
 0x269   : > { %1975 = vmatpush3.bf16.msra.mxu0 %v1974_v24 }
 0x26a   : > { %2003 = vmatpush3.bf16.msra.mxu1 %v2000_v22  ;;  %2009 = vmatprep.subr.bf16.mxu0 %v2008_v30  ;;  %v1327_v22 = vld [vmem:[#allocation7 + $0x4] ss:$0 sm:$0xff] }
 0x26b   : > { %2005 = vmatprep.subr.bf16.mxu1 %v2004_v27 }
 0x26e   : > { %2007 = vmatpush3.bf16.msra.mxu1 %v2004_v27 }
 0x31f   : > { %v1479_v31 = vpop.f32.mrb[8].mxu0 }
 0x320   : > { %v1480_v46 = vpop.f32.mrb[9].mxu0 }
 0x321   : > { %v1481_v33 = vadd.f32 %v1480_v46, %v1479_v31 }
 0x323   : > { %v1482_v34 = vpop.f32.mrb[10].mxu0  ;;  %v797_v35 = vadd.f32 %v1481_v33, %v1322_v49 }
 0x324   : > { %v1483_v36 = vpop.f32.mrb[11].mxu0  ;;  %v1681_v37 = vpop.f32.mrb[4].mxu1 }
 0x325   : > { %v1484_v38 = vadd.f32 %v1483_v36, %v1482_v34  ;;  %v871_v39 = vpop.f32.mrb[5].mxu1 }
 0x326   : > { %v872_v50 = vadd.f32 %v871_v39, %v797_v35 }
 0x327   : > { %v802_v57 = vadd.f32 %v1484_v38, %v1322_v49 }
 0x328   : > { %v880_v42 = vmax.f32 %v872_v50, 0.0 }
 0x329   : > { %v877_v43 = vadd.f32 %v1681_v37, %v802_v57 }
 0x32a   : > { %1002 = vmatprep.mubr.f32.mxu0 %v880_v42  ;;  %v882_v48 = vadd.f32 %v880_v42, %v2530_v23  ;;  %v2024_v23 = vpack.c.bf16 %v1102_v60, %v1101_v59 }
 0x32b   : > { %v881_v51 = vmax.f32 %v877_v43, 0.0  ;;  %1003 = vmatmul.mubr.f32.vlgmr.msra.gmra.mrb[12].mxu0 %v2275_v52 }
 0x32c   : > { %2011 = vmatpush3.bf16.msra.mxu0 %v2008_v30 }
 0x32d   : > { %v883_v53 = vadd.f32 %v881_v51, %v2534_v32  ;;  %1007 = vmatprep.mubr.f32.mxu0 %v881_v51  ;;  %1714 = vmatprep.mubr.f32.mxu1 %v881_v51  ;;  %v1103_v32 = vld [vmem:[#allocation5 + $0x6d0] sm:$0xff] }
 0x32e   : > { %1715 = vmatmul.mubr.f32.vlgmr.msra.gmra.mrb[6].mxu1 %v2275_v52  ;;  %2013 = vmatprep.subr.bf16.mxu0 %v2012_v44  ;;  %v2028_v62 = vpack.c.bf16 %v1104_v61, %v1103_v32 }
 0x32f   : > { %1008 = vmatmul.mubr.f32.gmra.mrb[14].mxu0 %v880_v42 }
 0x330   : > { %2015 = vmatpush3.bf16.msra.mxu0 %v2012_v44 }
 0x331   : > { %2017 = vmatprep.subr.bf16.mxu0 %v2016_v54 }
 0x334   : > { %2019 = vmatpush3.bf16.msra.mxu0 %v2016_v54 }
 0x335   : > { %2021 = vmatprep.subr.bf16.mxu0 %v2020_v58 }
 0x338   : > { %2023 = vmatpush3.bf16.msra.mxu0 %v2020_v58 }
 0x339   : > { %2025 = vmatprep.subr.bf16.mxu0 %v2024_v23 }
 0x33c   : > { %2027 = vmatpush3.bf16.msra.mxu0 %v2024_v23 }
 0x33d   : > { %2029 = vmatprep.subr.bf16.mxu0 %v2028_v62 }
 0x340   : > { %2031 = vmatpush3.bf16.msra.mxu0 %v2028_v62 }
 0x341   : > { %2033 = vmatprep.subr.bf16.mxu0 %v2032_v1 }
 0x344   : > { %2035 = vmatpush3.bf16.msra.mxu0 %v2032_v1 }
 0x345   : > { %2037 = vmatprep.subr.bf16.mxu0 %v2036_v4 }
 0x348   : > { %2039 = vmatpush3.bf16.msra.mxu0 %v2036_v4 }
 0x3fe   : > { %v1535_v5 = vpop.f32.mrb[12].mxu0 }
 0x3ff   : > { %v1536_v6 = vpop.f32.mrb[13].mxu0 }
 0x400   : > { %v1537_v8 = vadd.f32 %v1536_v6, %v1535_v5 }
 0x401   : > { %v1716_v9 = vpop.f32.mrb[6].mxu1 }
 0x402   : > { %v1538_v10 = vpop.f32.mrb[14].mxu0  ;;  %v1005_v11 = vadd.f32 %v1537_v8, %v1326_v7  ;;  %v1079_v12 = vpop.f32.mrb[7].mxu1 }
 0x403   : > { %v1539_v13 = vpop.f32.mrb[15].mxu0 }
 0x404   : > { %v1540_v14 = vadd.f32 %v1539_v13, %v1538_v10  ;;  %v1080_v15 = vadd.f32 %v1079_v12, %v1005_v11 }
 0x406   : > { %v1010_v16 = vadd.f32 %v1540_v14, %v1326_v7  ;;  %v1088_v17 = vmax.f32 %v1080_v15, 0.0 }
 0x408   : > { %v1085_v18 = vadd.f32 %v1716_v9, %v1010_v16  ;;  %v1090_v19 = vadd.f32 %v1088_v17, %v882_v48  ;;  %1749 = vmatprep.mubr.f32.mxu0 %v1088_v17 }
 0x40a   : > { %v1089_v20 = vmax.f32 %v1085_v18, 0.0 }
 0x40c   : > { %1750 = vmatmul.mubr.f32.vlgmr.msra.gmra.mrb[16].mxu0 %v1089_v20  ;;  %v1091_v21 = vadd.f32 %v1089_v20, %v883_v53 }
 0x4df   : > { %v1751_v24 = vpop.f32.mrb[16].mxu0 }
 0x4e0   : > { %v1186_v25 = vadd.f32 %v1751_v24, %v1327_v22  ;;  %v1180_v26 = vpop.f32.mrb[17].mxu0 }
 0x4e1   : > { %v1181_v27 = vadd.f32 %v1327_v22, %v1180_v26 }
 0x4e2   : > { %v1190_v28 = vmax.f32 %v1186_v25, 0.0 }
 0x4e3   : > { %v1189_v29 = vmax.f32 %v1181_v27, 0.0 }
 0x4e4   : > { %v1192_v30 = vadd.f32 %v1190_v28, %v1091_v21 }
 0x4e5   : > { %v1191_v31 = vadd.f32 %v1189_v29, %v1090_v19 }
 0x4e6   : > { %1194 = vst [vmem:[%s215_s18 + $0x8] sm:$0xff] %v1192_v30 }
 0x4e7   : > { %1193 = vst [vmem:[%s215_s18] sm:$0xff] %v1191_v31 }
 0x4e8   : > { %2211 = shalt.err (!%p2208_p1)
}
 0x4e9   : > { %s2212_s10 = scalar_lea.hbm %s2548_s27, 256  ;;  %s2216_s26 = scalar_lea.hbm %s2595_s3, 512 }
 0x4ea   : > { %p2213_p13 = scmp.ne.s32.totalorder %s2548_s27, %s2212_s10  ;;  %p2217_p4 = scmp.lt.u32.totalorder %s2548_s27, %s2595_s3 }
 0x4eb   : > { %p2218_p5 = scmp.lt.u32.totalorder %s2216_s26, %s2212_s10  ;;  %p2220_p11 = scmp.lt.u32.totalorder %s2212_s10, %s2548_s27 }
 0x4ec   : > { %p2214_p6 = pnand %p2213_p13, %p2609_p0 }
 0x4ed   : > { %p2219_p8 = por %p2218_p5, %p2217_p4 }
 0x4ee   : > { %p2215_p10 = pneg %p2214_p6 }
 0x4ef   : > { %p2221_p2 = por %p2220_p11, %p2219_p8 }
 0x4f1   : > { %p2222_p3 = pnand %p2221_p2, %p2215_p10 }
 0x4f3   : > { %2225 = shalt.err (!%p2222_p3)
}
 0x4f4   : > { %s2277_s28 = smov 128   ;;  %s2278_s18 = smov 8  }
 0x4f5   : > { %2050 = dma.vmem_to_hbm [thread:$0]  (%p2609_p0), %s2543_s20, 256, %s2548_s27, %s1196_s22, %s2277_s28, %s2277_s28, %s2278_s18  }
 0x4f6 PF: > { %s1224_s7 = sand.u32 1, %s2256_s12   ;;  %p2610_p7 = scmp.ne.s32.totalorder %s2600_s19, 0 }
 0x4f7   : > { %p2611_p9 = scmp.ge.s32.totalorder %s2268_s15, 2  ;;  %s1225_s8 = scalar_lea.sflag [#allocation4], %s1224_s7 }
 0x4f9   : > { %p2064_p12 = pnand %p2611_p9, %p2610_p7 }
 0x4fb   : > { %2251 = dma.done.wait (!%p2064_p12), %s1225_s8, 256  }
 0x4fc   : > { %2253 = vsyncadd (!%p2064_p12), %s1225_s8, 4294967040  ;;  %p17_p1 = scmp.ge.s32.totalorder %s2412_s4, 4   ;;  %s2612_s12 = smov %s2260_s13 }
 0x4fd   : > { %s2613_s13 = smov %s2264_s14  ;;  %s2614_s14 = smov %s2428_s9 }
 0x4fe   : > { %s2615_s15 = smov %s2412_s4  ;;  %19 = sbr.rel (!%p17_p1) target bundleno = 6 (0x6), region = 89 }
 0x505   :  { %1230 = vsyncpa [#allocation3], 1 }
 0x506   :  { %1232 = vsyncpa [#allocation3 + $0x1], 1 }
 0x507   :  { %1233 = vsyncpa [#allocation6], 1 }
 0x508   :  { %1234 = vsyncpa [#allocation4], 1 }
 0x509   :  { %1236 = vsyncpa [#allocation4 + $0x1], 1 }

</bundles_post_ra>
